<compile_context>
chip_gen: v6e
topology: v6e:2x2x1
jax: 0.10.0
libtpu: 0.0.40
codegen_flags: <defaults>
</compile_context>

<pallas_src>
import math

import jax
import jax.numpy as jnp
from jax.experimental import pallas as pl
from jax.experimental.pallas import tpu as pltpu


def _round_up(x: int, m: int) -> int:
    return (x + m - 1) // m * m


def _sagegcn_kernel(src_ref, nbr_ref, ws_ref, wr_ref, out_ref):
    # src_ref: (TM, D); nbr_ref: (TM, D*K); ws_ref: (D, TH); wr_ref: (D*K, TH); out_ref: (TM, TH)
    # Two MXU dots accumulating in f32 — no lane concat, no extra full-tile VMEM temp.
    h = jnp.dot(src_ref[...], ws_ref[...], preferred_element_type=jnp.float32)
    h = h + jnp.dot(nbr_ref[...], wr_ref[...], preferred_element_type=jnp.float32)
    out_ref[...] = jnp.maximum(h, 0.0).astype(out_ref.dtype)  # F.relu


def _vmem_capacity_bytes() -> int:
    try:
        return int(pltpu.get_tpu_info().vmem_capacity_bytes)
    except Exception:
        return 64 * 1024 * 1024  # conservative fallback (v7x per-TensorCore VMEM)


def _choose_block_m(requested: int, m: int, sublane: int) -> int:
    bm = min(int(requested), m)
    if bm >= m:
        return m                      # full-extent block (always legal)
    if bm >= 256:
        bm = bm // 256 * 256          # MXU-friendly multiple
    bm = bm // sublane * sublane      # sublane-aligned for partial tiling
    return m if bm <= 0 else bm


def sage_gcn_forward(src, nbr, w_aggr, w_self, *, block_m=None, compute_dtype=None):
    """SageGCN defaults: relu(src @ w_self + mean_k(nbr) @ w_aggr).

    src: (B, N, D); nbr: (B, N, D, K); w_aggr, w_self: (D, H) -> (B, N, H) float32.
    """
    B, N, D = src.shape
    assert nbr.shape[:3] == (B, N, D)
    K = nbr.shape[3]
    H = w_aggr.shape[1]
    assert w_self.shape == (D, H)
    M = B * N

    out_dtype = jnp.float32
    if compute_dtype is None:
        compute_dtype = src.dtype
    compute_dtype = jnp.dtype(compute_dtype)
    in_bytes = compute_dtype.itemsize
    out_bytes = jnp.dtype(out_dtype).itemsize
    sublane = max(8, 32 // in_bytes)   # 8 for f32, 16 for bf16

    # ---- layout: rows = nodes, feature*neighbor on the lane axis ----
    src_flat = src.reshape(M, D).astype(compute_dtype)
    nbr_flat = nbr.reshape(M, D * K).astype(compute_dtype)   # col d*K+k == nbr[..., d, k]

    # ---- fold the 1/K mean into a replicated weight (row d*K+k = w_aggr[d]/K) ----
    # NOTE: when weights are reused across many calls (a real model), precompute w_rep once
    # outside the per-step path; here it is built once per call.
    w_rep = (jnp.repeat(w_aggr, K, axis=0) * (1.0 / K)).astype(compute_dtype)
    w_s = w_self.astype(compute_dtype)
    w_rows = (K + 1) * D

    # ---- generation-aware VMEM budgeting ----
    vmem_cap = _vmem_capacity_bytes()
    tile_budget = int(0.45 * vmem_cap)   # ~57 MiB on v5e/v6e (128 MiB VMEM), ~28 MiB on v7x (64 MiB)

    # Bound the resident (replicated) weight; tile H only when it is big and lane-aligned.
    block_h = H
    w_budget = min(8 * 1024 * 1024, vmem_cap // 8)
    if H % 128 == 0 and w_rows * H * in_bytes > w_budget:
        block_h = max(128, (w_budget // (w_rows * in_bytes)) // 128 * 128)
        block_h = min(block_h, H)
    assert block_h == H or block_h % 128 == 0

    # Honest per-row VMEM cost: double-buffered inputs + double-buffered output + f32 accumulator.
    row_bytes = 2 * (D + D * K) * in_bytes + 2 * block_h * out_bytes + block_h * 4
    w_block_bytes = 2 * w_rows * block_h * in_bytes   # worst case (double-buffered) weight blocks

    if block_m is None:
        bm = max(sublane, (tile_budget - w_block_bytes) // row_bytes)
        # Keep >= 2 row steps on large M so the parallel row axis feeds both v7x TensorCores.
        bm = min(bm, _round_up(pl.cdiv(M, 2), 256))
        block_m = bm
    block_m = _choose_block_m(block_m, M, sublane)

    gm = pl.cdiv(M, block_m)
    gh = pl.cdiv(H, block_h)
    grid = (gh, gm)   # H outer (weight block DMA'd once per H block), rows inner (pipelined)

    vmem_needed = block_m * row_bytes + w_block_bytes
    vmem_limit = int(min(max(vmem_needed + (8 << 20), 32 << 20), int(0.9 * vmem_cap)))
    vmem_limit = max(vmem_limit, vmem_needed + (2 << 20))   # never undercut the real footprint

    cost = pl.CostEstimate(
        flops=2 * M * w_rows * H,
        transcendentals=0,
        bytes_accessed=(M * (D + D * K) * in_bytes
                        + w_rows * H * in_bytes
                        + M * H * out_bytes),
    )

    def _call(single_buffer_weights):
        w_kwargs = {"pipeline_mode": pl.Buffered(1)} if single_buffer_weights else {}
        return pl.pallas_call(
            _sagegcn_kernel,
            out_shape=jax.ShapeDtypeStruct((M, H), out_dtype),
            grid=grid,
            in_specs=[
                pl.BlockSpec((block_m, D), lambda h, m: (m, 0)),
                pl.BlockSpec((block_m, D * K), lambda h, m: (m, 0)),
                pl.BlockSpec((D, block_h), lambda h, m: (0, h), **w_kwargs),
                pl.BlockSpec((D * K, block_h), lambda h, m: (0, h), **w_kwargs),
            ],
            out_specs=pl.BlockSpec((block_m, block_h), lambda h, m: (m, h)),
            compiler_params=pltpu.CompilerParams(
                dimension_semantics=("parallel", "parallel"),
                vmem_limit_bytes=vmem_limit,
            ),
            cost_estimate=cost,
        )(src_flat, nbr_flat, w_s, w_rep)

    try:
        # Constant (per row step) weight blocks: single-buffer them to free VMEM.
        out = _call(True)
    except Exception:
        # Fallback if this Pallas build rejects pl.Buffered(1) on TPU inputs.
        out = _call(False)

    return out.reshape(B, N, H)


def kaiming_uniform(key, shape, dtype=jnp.float32):
    # Deterministic example init in the spirit of torch.nn.init.kaiming_uniform_.
    fan_in = shape[0]
    bound = math.sqrt(2.0) * math.sqrt(3.0 / fan_in)
    return jax.random.uniform(key, shape, dtype=dtype, minval=-bound, maxval=bound)


if __name__ == "__main__":
    # Small deterministic problem: B=2 graphs, N=8 src nodes each,
    # input_dim D=16, K=4 sampled neighbors, hidden_dim H=32.
    B, N, D, K, H = 2, 8, 16, 4, 32

    key = jax.random.PRNGKey(0)
    k_src, k_nbr, k_wa, k_ws = jax.random.split(key, 4)

    src = jax.random.normal(k_src, (B, N, D), dtype=jnp.float32)
    nbr = jax.random.normal(k_nbr, (B, N, D, K), dtype=jnp.float32)
    w_aggr = kaiming_uniform(k_wa, (D, H))   # NeighborAggregator.weight
    w_self = kaiming_uniform(k_ws, (D, H))   # SageGCN.b

    # Pure-JAX reference of the original forward semantics (mean -> matmul -> sum -> relu).
    ref = jnp.maximum(
        jnp.matmul(src, w_self) + jnp.matmul(jnp.mean(nbr, axis=3), w_aggr), 0.0)

    # f32 path; block_m=8 so the small demo exercises multiple pipelined row steps.
    out = jax.block_until_ready(sage_gcn_forward(src, nbr, w_aggr, w_self, block_m=8))
    assert out.shape == (B, N, H)
    assert jnp.allclose(out, ref, atol=1e-4, rtol=1e-4), float(jnp.max(jnp.abs(out - ref)))

    # Auto-sized tiles (generation-aware VMEM budget).
    out_auto = jax.block_until_ready(sage_gcn_forward(src, nbr, w_aggr, w_self))
    assert jnp.allclose(out_auto, ref, atol=1e-4, rtol=1e-4)

    # Non-divisible row count (M=14, block_m=8): exercises the unpadded partial last block.
    out_part = jax.block_until_ready(
        sage_gcn_forward(src[:, :7], nbr[:, :7], w_aggr, w_self, block_m=8))
    assert jnp.allclose(out_part, ref[:, :7], atol=1e-4, rtol=1e-4)

    # bf16 compute path (kernel is HBM-bandwidth bound -> ~2x fewer bytes), f32 accumulation.
    out_bf16 = jax.block_until_ready(
        sage_gcn_forward(src, nbr, w_aggr, w_self, compute_dtype=jnp.bfloat16))
    assert jnp.allclose(out_bf16, ref, atol=0.2, rtol=0.1)

    # TODO(synk): non-default branches of the PyTorch module (aggr_neighbor 'sum'/'max',
    # aggr_hidden 'concat', aggregator bias, activation=None) are not implemented here.

    print("KERNEL_OK")
</pallas_src>

<mosaic_0001>
module attributes {stable_mosaic.version = 11 : i64} {
  func.func @_sagegcn_kernel(%arg0: i32, %arg1: i32, %arg2: memref<8x16xf32, #tpu.memory_space<vmem>>, %arg3: memref<8x64xf32, #tpu.memory_space<vmem>>, %arg4: memref<16x32xf32, #tpu.memory_space<vmem>>, %arg5: memref<64x32xf32, #tpu.memory_space<vmem>>, %arg6: memref<8x32xf32, #tpu.memory_space<vmem>>) attributes {dimension_semantics = [#tpu.dimension_semantics<parallel>, #tpu.dimension_semantics<parallel>], iteration_bounds = array<i64: 1, 2>, scalar_prefetch = 0 : i64, scratch_operands = 0 : i64, tpu.core_type = #tpu.core_type<tc>, window_params = [{transform_indices = @transform_0, window_bounds = array<i64: 8, 16>}, {transform_indices = @transform_1, window_bounds = array<i64: 8, 64>}, {pipeline_mode = #tpu.pipeline_mode<synchronous>, transform_indices = @transform_2, window_bounds = array<i64: 16, 32>}, {pipeline_mode = #tpu.pipeline_mode<synchronous>, transform_indices = @transform_3, window_bounds = array<i64: 64, 32>}, {transform_indices = @transform_4, window_bounds = array<i64: 8, 32>}]} {
    %c0 = arith.constant 0 : index
    %c0_0 = arith.constant 0 : index
    %0 = vector.load %arg2[%c0, %c0_0] : memref<8x16xf32, #tpu.memory_space<vmem>>, vector<8x16xf32>
    %c0_1 = arith.constant 0 : index
    %c0_2 = arith.constant 0 : index
    %1 = vector.load %arg4[%c0_1, %c0_2] : memref<16x32xf32, #tpu.memory_space<vmem>>, vector<16x32xf32>
    %cst = arith.constant dense<0.000000e+00> : vector<8x32xf32>
    %2 = tpu.matmul %0, %1, %cst {dimension_numbers = #tpu.dot_dimension_numbers<[1], [0], [0], [1], [0, 0, 1, 1], [], []>} : vector<8x16xf32>, vector<16x32xf32>, vector<8x32xf32> -> vector<8x32xf32>
    %c0_3 = arith.constant 0 : index
    %c0_4 = arith.constant 0 : index
    %3 = vector.load %arg3[%c0_3, %c0_4] : memref<8x64xf32, #tpu.memory_space<vmem>>, vector<8x64xf32>
    %c0_5 = arith.constant 0 : index
    %c0_6 = arith.constant 0 : index
    %4 = vector.load %arg5[%c0_5, %c0_6] : memref<64x32xf32, #tpu.memory_space<vmem>>, vector<64x32xf32>
    %cst_7 = arith.constant dense<0.000000e+00> : vector<8x32xf32>
    %5 = tpu.matmul %3, %4, %cst_7 {dimension_numbers = #tpu.dot_dimension_numbers<[1], [0], [0], [1], [0, 0, 1, 1], [], []>} : vector<8x64xf32>, vector<64x32xf32>, vector<8x32xf32> -> vector<8x32xf32>
    %6 = arith.addf %2, %5 : vector<8x32xf32>
    %cst_8 = arith.constant 0.000000e+00 : f32
    %7 = vector.broadcast %cst_8 : f32 to vector<8x32xf32>
    %8 = arith.maximumf %6, %7 : vector<8x32xf32>
    %c0_9 = arith.constant 0 : index
    %c0_10 = arith.constant 0 : index
    %9 = vector.load %arg6[%c0_9, %c0_10] : memref<8x32xf32, #tpu.memory_space<vmem>>, vector<8x32xf32>
    tpu.vector_store %arg6[%c0_9, %c0_10], %8 {strides = array<i32>} : memref<8x32xf32, #tpu.memory_space<vmem>>, vector<8x32xf32>,
    return
  }
  func.func @transform_0(%arg0: i32, %arg1: i32) -> (i32, i32) {
    %c0_i32 = arith.constant 0 : i32
    %c0_i32_0 = arith.constant 0 : i32
    return %arg1, %c0_i32 : i32, i32
  }
  func.func @transform_1(%arg0: i32, %arg1: i32) -> (i32, i32) {
    %c0_i32 = arith.constant 0 : i32
    %c0_i32_0 = arith.constant 0 : i32
    return %arg1, %c0_i32 : i32, i32
  }
  func.func @transform_2(%arg0: i32, %arg1: i32) -> (i32, i32) {
    %c0_i32 = arith.constant 0 : i32
    %c0_i32_0 = arith.constant 0 : i32
    return %c0_i32, %arg0 : i32, i32
  }
  func.func @transform_3(%arg0: i32, %arg1: i32) -> (i32, i32) {
    %c0_i32 = arith.constant 0 : i32
    %c0_i32_0 = arith.constant 0 : i32
    return %c0_i32, %arg0 : i32, i32
  }
  func.func @transform_4(%arg0: i32, %arg1: i32) -> (i32, i32) {
    %c0_i32 = arith.constant 0 : i32
    return %arg1, %arg0 : i32, i32
  }
}

module attributes {stable_mosaic.version = 11 : i64} {
  func.func @_sagegcn_kernel(%arg0: i32, %arg1: i32, %arg2: memref<8x16xf32, #tpu.memory_space<vmem>>, %arg3: memref<8x64xf32, #tpu.memory_space<vmem>>, %arg4: memref<16x32xf32, #tpu.memory_space<vmem>>, %arg5: memref<64x32xf32, #tpu.memory_space<vmem>>, %arg6: memref<8x32xf32, #tpu.memory_space<vmem>>) attributes {dimension_semantics = [#tpu.dimension_semantics<parallel>, #tpu.dimension_semantics<parallel>], iteration_bounds = array<i64: 1, 2>, scalar_prefetch = 0 : i64, scratch_operands = 0 : i64, tpu.core_type = #tpu.core_type<tc>, window_params = [{transform_indices = @transform_0, window_bounds = array<i64: 8, 16>}, {transform_indices = @transform_1, window_bounds = array<i64: 8, 64>}, {transform_indices = @transform_2, window_bounds = array<i64: 16, 32>}, {transform_indices = @transform_3, window_bounds = array<i64: 64, 32>}, {transform_indices = @transform_4, window_bounds = array<i64: 8, 32>}]} {
    %c0 = arith.constant 0 : index
    %c0_0 = arith.constant 0 : index
    %0 = vector.load %arg2[%c0, %c0_0] : memref<8x16xf32, #tpu.memory_space<vmem>>, vector<8x16xf32>
    %c0_1 = arith.constant 0 : index
    %c0_2 = arith.constant 0 : index
    %1 = vector.load %arg4[%c0_1, %c0_2] : memref<16x32xf32, #tpu.memory_space<vmem>>, vector<16x32xf32>
    %cst = arith.constant dense<0.000000e+00> : vector<8x32xf32>
    %2 = tpu.matmul %0, %1, %cst {dimension_numbers = #tpu.dot_dimension_numbers<[1], [0], [0], [1], [0, 0, 1, 1], [], []>} : vector<8x16xf32>, vector<16x32xf32>, vector<8x32xf32> -> vector<8x32xf32>
    %c0_3 = arith.constant 0 : index
    %c0_4 = arith.constant 0 : index
    %3 = vector.load %arg3[%c0_3, %c0_4] : memref<8x64xf32, #tpu.memory_space<vmem>>, vector<8x64xf32>
    %c0_5 = arith.constant 0 : index
    %c0_6 = arith.constant 0 : index
    %4 = vector.load %arg5[%c0_5, %c0_6] : memref<64x32xf32, #tpu.memory_space<vmem>>, vector<64x32xf32>
    %cst_7 = arith.constant dense<0.000000e+00> : vector<8x32xf32>
    %5 = tpu.matmul %3, %4, %cst_7 {dimension_numbers = #tpu.dot_dimension_numbers<[1], [0], [0], [1], [0, 0, 1, 1], [], []>} : vector<8x64xf32>, vector<64x32xf32>, vector<8x32xf32> -> vector<8x32xf32>
    %6 = arith.addf %2, %5 : vector<8x32xf32>
    %cst_8 = arith.constant 0.000000e+00 : f32
    %7 = vector.broadcast %cst_8 : f32 to vector<8x32xf32>
    %8 = arith.maximumf %6, %7 : vector<8x32xf32>
    %c0_9 = arith.constant 0 : index
    %c0_10 = arith.constant 0 : index
    %9 = vector.load %arg6[%c0_9, %c0_10] : memref<8x32xf32, #tpu.memory_space<vmem>>, vector<8x32xf32>
    tpu.vector_store %arg6[%c0_9, %c0_10], %8 {strides = array<i32>} : memref<8x32xf32, #tpu.memory_space<vmem>>, vector<8x32xf32>,
    return
  }
  func.func @transform_0(%arg0: i32, %arg1: i32) -> (i32, i32) {
    %c0_i32 = arith.constant 0 : i32
    %c0_i32_0 = arith.constant 0 : i32
    return %arg1, %c0_i32 : i32, i32
  }
  func.func @transform_1(%arg0: i32, %arg1: i32) -> (i32, i32) {
    %c0_i32 = arith.constant 0 : i32
    %c0_i32_0 = arith.constant 0 : i32
    return %arg1, %c0_i32 : i32, i32
  }
  func.func @transform_2(%arg0: i32, %arg1: i32) -> (i32, i32) {
    %c0_i32 = arith.constant 0 : i32
    %c0_i32_0 = arith.constant 0 : i32
    return %c0_i32, %arg0 : i32, i32
  }
  func.func @transform_3(%arg0: i32, %arg1: i32) -> (i32, i32) {
    %c0_i32 = arith.constant 0 : i32
    %c0_i32_0 = arith.constant 0 : i32
    return %c0_i32, %arg0 : i32, i32
  }
  func.func @transform_4(%arg0: i32, %arg1: i32) -> (i32, i32) {
    %c0_i32 = arith.constant 0 : i32
    return %arg1, %arg0 : i32, i32
  }
}

</mosaic_0001>

<bundles_post_ra>
// kernel: tpu_custom_call.1
= control target key start
LH: loop header
LB: loop body
LE: loop exit
PB: predicated region body
PF: predicated region fallthrough
CT: control target
= control target key end

     0   :  { %9 = vsyncpa [#allocation3], 0  ;;  %s897_s0 = inlined_call_operand.vmem [shape: f32[16,16], index: 0, kind: input, shape index: {}]   ;;  %s898_s1 = inlined_call_operand.vmem [shape: f32[16,64], index: 1, kind: input, shape index: {}]   ;;  %s899_s2 = inlined_call_operand.vmem [shape: f32[16,32], index: 2, kind: input, shape index: {}]   ;;  %s900_s3 = inlined_call_operand.vmem [shape: f32[64,32], index: 3, kind: input, shape index: {}]   ;;  %s901_s4 = inlined_call_operand.hbm [shape: f32[16,32], index: 4, kind: output, shape index: {}]  }
   0x1   :  { %11 = vsyncpa [#allocation3 + $0x1], 0  ;;  %s763_s15 = smov 0   ;;  %s765_s16 = smov 0  }
   0x2   :  { %s767_s17 = smov 0   ;;  %s769_s18 = smov 0  }
   0x3   :  { %s771_s19 = smov 0   ;;  %s773_s20 = smov 0  }
   0x4 LB: > { %s546_s21 = sadd.s32 4294967295, %s733_s20   ;;  %s547_s22 = sadd.s32 4294967294, %s733_s20   ;;  %s733_s20 = sphi %s773_s20, %s17_s20   ;;  %s729_s19 = sphi %s771_s19, %s908_s19   ;;  %s725_s18 = sphi %s769_s18, %s907_s18   ;;  %s721_s17 = sphi %s767_s17, %s906_s17   ;;  %s717_s16 = sphi %s765_s16, %s905_s16   ;;  %s713_s15 = sphi %s763_s15, %s904_s15  }
   0x5   : > { %s26_s23 = sadd.s32 1, %s729_s19  ;;  %s142_s24 = sadd.s32 1, %s721_s17 }
   0x6   : > { %p27_p0 = scmp.ge.s32.totalorder %s26_s23, 2  ;;  %p152_p1 = scmp.ne.s32.totalorder %s721_s17, %s717_s16 }
   0x7   : > { %p153_p2 = scmp.eq.s32.totalorder %s546_s21, 1  ;;  %p158_p3 = scmp.ne.s32.totalorder %s717_s16, %s713_s15 }
   0x8   : > { %s910_s23 = smov (%p27_p0, %s26_s23), 0  ;;  %p159_p5 = scmp.eq.s32.totalorder %s547_s22, 1 }
   0x9   : > { %p803_p4 = por %p153_p2, %p152_p1  ;;  %s137_s26 = ssub.s32 %s729_s19, %s910_s23 }
   0xa   : > { %p552_p6 = scmp.ge.s32.totalorder %s733_s20, 1  ;;  %p140_p7 = scmp.eq.s32.totalorder %s137_s26, 0 }
   0xb   : > { %p810_p8 = por %p159_p5, %p158_p3  ;;  %p205_p9 = scmp.lt.s32.totalorder %s733_s20, 3 }
   0xc   : > { %s816_s28 = scalar_select %p140_p7, %s721_s17, %s142_s24  }
   0xd   : > { %p206_p10 = pnand %p552_p6, %p205_p9 }
   0xe   : > { %p242_p11 = scmp.lt.s32.totalorder (!%p206_p10), %s725_s18, 1  ;;  %s239_s22 = sand.u32 (!%p206_p10), 1, %s717_s16  }
   0xf   : > { %209 = sbr.rel (%p206_p10) target bundleno = 247 (0xf7), region = 36  ;;  %s553_s24 = sshll.u32 (!%p206_p10), %s239_s22, 3 }
  0x10   : > { %s559_s26 = sshll.u32 (!%p206_p10), %s725_s18, 7  ;;  %s422_s7 = scalar_lea.sflag (!%p206_p10), [#allocation3], %s239_s22 }
  0x11   : > { %s434_s6 = scalar_lea.hbm (!%p206_p10), %s901_s4, %s559_s26  ;;  %s737_s9 = smov (!%p206_p10), [#allocation2]  }
  0x14   : > { %v269_v0 = vld [vmem:[%s900_s3 + $0x38] sm:$0xff]  ;;  %v735_v1 = vmov 0.0   ;;  %v268_v2 = vld [vmem:[%s900_s3 + $0x30] sm:$0xff]  ;;  %v260_v3 = vld [vmem:[%s899_s2 + $0x8] sm:$0xff]  ;;  %vm736_vm0 = vmmov 0   ;;  %s243_s11 = scalar_select %p242_p11, %s725_s18, 1 }
  0x15   : > { %574 = vmatprep.subr.mxu0 %v735_v1  ;;  %593 = vmatprep.subr.mxu1 %v735_v1  ;;  %v259_v4 = vld [vmem:[%s899_s2] sm:$0xff]  ;;  %v267_v5 = vld [vmem:[%s900_s3 + $0x28] sm:$0xff]  ;;  %vm344_vm1 = vcmask 130048   ;;  %v265_v8 = vld [vmem:[%s900_s3 + $0x18] sm:$0xff]  ;;  %vm270_vm2 = vcmask 523264   ;;  %vm419_vm3 = vcmask 261120  }
  0x16   : > { %575 = vmatpush3.msra.mxu0 %v269_v0  ;;  %597 = vmatprep.mubr.msk.f32.mxu1 %vm736_vm0, %v735_v1  ;;  %s554_s14 = sshll.u32 %s243_s11, 3  ;;  %v266_v6 = vld [vmem:[%s900_s3 + $0x20] sm:$0xff]  ;;  %v264_v9 = vld [vmem:[%s900_s3 + $0x10] sm:$0xff]  ;;  %v263_v10 = vld [vmem:[%s900_s3 + $0x8] sm:$0xff]  ;;  %s661_s18 = sshll.u32 %s737_s9, 4  ;;  %s662_s18 = int_to_ptr.vmem [resolvable:$false] %s661_s18 }
  0x17   : > { %576 = vmatprep.subr.mxu0 %v735_v1  ;;  %594 = vmatpush3.msra.mxu1 %v260_v3  ;;  %s245_s29 = scalar_lea.vmem %s897_s0, %s554_s14  ;;  %s249_s12 = scalar_lea.vmem %s898_s1, %s554_s14  ;;  %v262_v11 = vld [vmem:[%s900_s3] sm:$0xff] }
  0x18   : > { %577 = vmatpush3.msra.mxu0 %v268_v2  ;;  %595 = vmatprep.subr.mxu1 %v735_v1  ;;  %v258_v7 = vld [vmem:[%s245_s29] sm:$0xff]  ;;  %s241_s14 = scalar_lea.vmem [#allocation2], %s553_s24  ;;  %s663_s10 = scalar_lea.vmem %s662_s18, 256 }
  0x19   : > { %578 = vmatprep.subr.mxu0 %v735_v1  ;;  %596 = vmatpush3.msra.mxu1 %v259_v4  ;;  %v261_v12 = vld [vmem:[%s249_s12] sm:$0xff]  ;;  %s436_s29 = sshll.u32 %s241_s14, 4  ;;  %s437_s29 = int_to_ptr.vmem [resolvable:$true] %s436_s29 }
  0x1a   : > { %579 = vmatpush3.msra.mxu0 %v267_v5  ;;  %590 = vmatprep.mubr.msk.f32.mxu0 %vm736_vm0, %v735_v1  ;;  %s657_s8 = scalar_lea.vmem %s437_s29, 128  ;;  %p664_p1 = scmp.lt.s32.totalorder %s437_s29, %s662_s18 }
  0x1b   : > { %580 = vmatprep.subr.mxu0 %v735_v1  ;;  %598 = vmatmul.mubr.msk.f32.vlgmr.msra.gmra.mxu1 %vm344_vm1, %v258_v7  ;;  %p658_p12 = scmp.ne.s32.totalorder %s437_s29, %s657_s8  ;;  %p665_p2 = scmp.lt.s32.totalorder %s663_s10, %s657_s8 }
  0x1c   : > { %581 = vmatpush3.msra.mxu0 %v266_v6 }
  0x1d   : > { %582 = vmatprep.subr.mxu0 %v735_v1  ;;  %p659_p13 = pnand %p658_p12, %p803_p4  ;;  %p666_p3 = por %p665_p2, %p664_p1 }
  0x1e   : > { %583 = vmatpush3.msra.mxu0 %v265_v8 }
  0x1f   : > { %584 = vmatprep.subr.mxu0 %v735_v1  ;;  %p660_p0 = pneg %p659_p13 }
  0x20   : > { %585 = vmatpush3.msra.mxu0 %v264_v9 }
  0x21   : > { %586 = vmatprep.subr.mxu0 %v735_v1  ;;  %p667_p5 = pnand %p666_p3, %p660_p0 }
  0x22   : > { %587 = vmatpush3.msra.mxu0 %v263_v10 }
  0x23   : > { %588 = vmatprep.subr.mxu0 %v735_v1 }
  0x24   : > { %589 = vmatpush3.msra.mxu0 %v262_v11 }
  0x25   : > { %591 = vmatmul.mubr.msk.f32.vlgmr.msra.gmra.mxu0 %vm270_vm2, %v261_v12 }
  0xdb   : > { %v414_v13 = vpop.f32.mrf.mxu1 }
  0xdd   : > { %v599_v14 = vpop.f32.mrf.mxu1 }
  0xe5   : > { %v340_v15 = vpop.f32.mrf.mxu0 }
  0xe6   : > { %v415_v16 = vadd.f32 %v414_v13, %v340_v15 }
  0xe7   : > { %v592_v17 = vpop.f32.mrf.mxu0 }
  0xe8   : > { %v418_v18 = vmax.f32 %v415_v16, 0.0 }
  0xea   : > { %420 = vst.msk [vmem:[%s241_s14] sm:$0xff] %vm419_vm3, %v418_v18 }
  0xeb   : > { %670 = shalt.err (!%p667_p5)
}
  0xec   : > { %s671_s11 = scalar_lea.hbm %s434_s6, 128  ;;  %s675_s21 = scalar_lea.hbm %s901_s4, 256 }
  0xed   : > { %p672_p6 = scmp.ne.s32.totalorder %s434_s6, %s671_s11  ;;  %p676_p10 = scmp.lt.s32.totalorder %s434_s6, %s901_s4 }
  0xee   : > { %p677_p11 = scmp.lt.s32.totalorder %s675_s21, %s671_s11 }
  0xef   : > { %p673_p7 = pnand %p672_p6, %p803_p4 }
  0xf0   : > { %p678_p12 = por %p677_p11, %p676_p10 }
  0xf1   : > { %p674_p9 = pneg %p673_p7 }
  0xf3   : > { %p679_p13 = pnand %p678_p12, %p674_p9 }
  0xf5   : > { %682 = shalt.err (!%p679_p13)
}
  0xf6   : > { %600 = dma.vmem_to_hbm [thread:$0]  (%p803_p4), %s437_s29, 128, %s434_s6, %s422_s7  }
  0xf7 PF: > { %p606_p0 = scmp.ge.s32.totalorder %s733_s20, 2  ;;  %s448_s26 = sand.u32 1, %s713_s15  }
  0xf8   : > { %s449_s14 = scalar_lea.sflag [#allocation3], %s448_s26 }
  0xf9   : > { %p603_p1 = pnand %p606_p0, %p810_p8 }
  0xfb   : > { %p604_p2 = pneg %p603_p1 }
  0xfd   : > { %708 = dma.done.wait (%p604_p2), %s449_s14, 128  }
  0xfe   : > { %710 = vsyncadd (%p604_p2), %s449_s14, 4294967168  ;;  %s17_s20 = sadd.s32 1, %s733_s20   ;;  %s904_s15 = smov %s717_s16 }
  0xff   : > { %p14_p3 = scmp.ge.s32.totalorder %s17_s20, 4   ;;  %s905_s16 = smov %s721_s17 }
 0x100   : > { %s906_s17 = smov %s816_s28  ;;  %s907_s18 = smov %s729_s19 }
 0x101   : > { %s908_s19 = smov %s910_s23  ;;  %16 = sbr.rel (!%p14_p3) target bundleno = 4 (0x4), region = 80 }
 0x106   :  { %454 = vsyncpa [#allocation3], 1 }
 0x107   :  { %456 = vsyncpa [#allocation3 + $0x1], 1 }

// kernel: tpu_custom_call.1
= control target key start
LH: loop header
LB: loop body
LE: loop exit
PB: predicated region body
PF: predicated region fallthrough
CT: control target
= control target key end

     0   :  { %9 = vsyncpa [#allocation3], 0  ;;  %s897_s0 = inlined_call_operand.vmem [shape: f32[16,16], index: 0, kind: input, shape index: {}]   ;;  %s898_s1 = inlined_call_operand.vmem [shape: f32[16,64], index: 1, kind: input, shape index: {}]   ;;  %s899_s2 = inlined_call_operand.vmem [shape: f32[16,32], index: 2, kind: input, shape index: {}]   ;;  %s900_s3 = inlined_call_operand.vmem [shape: f32[64,32], index: 3, kind: input, shape index: {}]   ;;  %s901_s4 = inlined_call_operand.hbm [shape: f32[16,32], index: 4, kind: output, shape index: {}]  }
   0x1   :  { %11 = vsyncpa [#allocation3 + $0x1], 0  ;;  %s763_s15 = smov 0   ;;  %s765_s16 = smov 0  }
   0x2   :  { %s767_s17 = smov 0   ;;  %s769_s18 = smov 0  }
   0x3   :  { %s771_s19 = smov 0   ;;  %s773_s20 = smov 0  }
   0x4 LB: > { %s546_s21 = sadd.s32 4294967295, %s733_s20   ;;  %s547_s22 = sadd.s32 4294967294, %s733_s20   ;;  %s733_s20 = sphi %s773_s20, %s17_s20   ;;  %s729_s19 = sphi %s771_s19, %s908_s19   ;;  %s725_s18 = sphi %s769_s18, %s907_s18   ;;  %s721_s17 = sphi %s767_s17, %s906_s17   ;;  %s717_s16 = sphi %s765_s16, %s905_s16   ;;  %s713_s15 = sphi %s763_s15, %s904_s15  }
   0x5   : > { %s26_s23 = sadd.s32 1, %s729_s19  ;;  %s142_s24 = sadd.s32 1, %s721_s17 }
   0x6   : > { %p27_p0 = scmp.ge.s32.totalorder %s26_s23, 2  ;;  %p152_p1 = scmp.ne.s32.totalorder %s721_s17, %s717_s16 }
   0x7   : > { %p153_p2 = scmp.eq.s32.totalorder %s546_s21, 1  ;;  %p158_p3 = scmp.ne.s32.totalorder %s717_s16, %s713_s15 }
   0x8   : > { %s910_s23 = smov (%p27_p0, %s26_s23), 0  ;;  %p159_p5 = scmp.eq.s32.totalorder %s547_s22, 1 }
   0x9   : > { %p803_p4 = por %p153_p2, %p152_p1  ;;  %s137_s26 = ssub.s32 %s729_s19, %s910_s23 }
   0xa   : > { %p552_p6 = scmp.ge.s32.totalorder %s733_s20, 1  ;;  %p140_p7 = scmp.eq.s32.totalorder %s137_s26, 0 }
   0xb   : > { %p810_p8 = por %p159_p5, %p158_p3  ;;  %p205_p9 = scmp.lt.s32.totalorder %s733_s20, 3 }
   0xc   : > { %s816_s28 = scalar_select %p140_p7, %s721_s17, %s142_s24  }
   0xd   : > { %p206_p10 = pnand %p552_p6, %p205_p9 }
   0xe   : > { %p242_p11 = scmp.lt.s32.totalorder (!%p206_p10), %s725_s18, 1  ;;  %s239_s22 = sand.u32 (!%p206_p10), 1, %s717_s16  }
   0xf   : > { %209 = sbr.rel (%p206_p10) target bundleno = 247 (0xf7), region = 36  ;;  %s553_s24 = sshll.u32 (!%p206_p10), %s239_s22, 3 }
  0x10   : > { %s559_s26 = sshll.u32 (!%p206_p10), %s725_s18, 7  ;;  %s422_s7 = scalar_lea.sflag (!%p206_p10), [#allocation3], %s239_s22 }
  0x11   : > { %s434_s6 = scalar_lea.hbm (!%p206_p10), %s901_s4, %s559_s26  ;;  %s737_s9 = smov (!%p206_p10), [#allocation2]  }
  0x14   : > { %v269_v0 = vld [vmem:[%s900_s3 + $0x38] sm:$0xff]  ;;  %v735_v1 = vmov 0.0   ;;  %v268_v2 = vld [vmem:[%s900_s3 + $0x30] sm:$0xff]  ;;  %v260_v3 = vld [vmem:[%s899_s2 + $0x8] sm:$0xff]  ;;  %vm736_vm0 = vmmov 0   ;;  %s243_s11 = scalar_select %p242_p11, %s725_s18, 1 }
  0x15   : > { %574 = vmatprep.subr.mxu0 %v735_v1  ;;  %593 = vmatprep.subr.mxu1 %v735_v1  ;;  %v259_v4 = vld [vmem:[%s899_s2] sm:$0xff]  ;;  %v267_v5 = vld [vmem:[%s900_s3 + $0x28] sm:$0xff]  ;;  %vm344_vm1 = vcmask 130048   ;;  %v265_v8 = vld [vmem:[%s900_s3 + $0x18] sm:$0xff]  ;;  %vm270_vm2 = vcmask 523264   ;;  %vm419_vm3 = vcmask 261120  }
  0x16   : > { %575 = vmatpush3.msra.mxu0 %v269_v0  ;;  %597 = vmatprep.mubr.msk.f32.mxu1 %vm736_vm0, %v735_v1  ;;  %s554_s14 = sshll.u32 %s243_s11, 3  ;;  %v266_v6 = vld [vmem:[%s900_s3 + $0x20] sm:$0xff]  ;;  %v264_v9 = vld [vmem:[%s900_s3 + $0x10] sm:$0xff]  ;;  %v263_v10 = vld [vmem:[%s900_s3 + $0x8] sm:$0xff]  ;;  %s661_s18 = sshll.u32 %s737_s9, 4  ;;  %s662_s18 = int_to_ptr.vmem [resolvable:$false] %s661_s18 }
  0x17   : > { %576 = vmatprep.subr.mxu0 %v735_v1  ;;  %594 = vmatpush3.msra.mxu1 %v260_v3  ;;  %s245_s29 = scalar_lea.vmem %s897_s0, %s554_s14  ;;  %s249_s12 = scalar_lea.vmem %s898_s1, %s554_s14  ;;  %v262_v11 = vld [vmem:[%s900_s3] sm:$0xff] }
  0x18   : > { %577 = vmatpush3.msra.mxu0 %v268_v2  ;;  %595 = vmatprep.subr.mxu1 %v735_v1  ;;  %v258_v7 = vld [vmem:[%s245_s29] sm:$0xff]  ;;  %s241_s14 = scalar_lea.vmem [#allocation2], %s553_s24  ;;  %s663_s10 = scalar_lea.vmem %s662_s18, 256 }
  0x19   : > { %578 = vmatprep.subr.mxu0 %v735_v1  ;;  %596 = vmatpush3.msra.mxu1 %v259_v4  ;;  %v261_v12 = vld [vmem:[%s249_s12] sm:$0xff]  ;;  %s436_s29 = sshll.u32 %s241_s14, 4  ;;  %s437_s29 = int_to_ptr.vmem [resolvable:$true] %s436_s29 }
  0x1a   : > { %579 = vmatpush3.msra.mxu0 %v267_v5  ;;  %590 = vmatprep.mubr.msk.f32.mxu0 %vm736_vm0, %v735_v1  ;;  %s657_s8 = scalar_lea.vmem %s437_s29, 128  ;;  %p664_p1 = scmp.lt.s32.totalorder %s437_s29, %s662_s18 }
  0x1b   : > { %580 = vmatprep.subr.mxu0 %v735_v1  ;;  %598 = vmatmul.mubr.msk.f32.vlgmr.msra.gmra.mxu1 %vm344_vm1, %v258_v7  ;;  %p658_p12 = scmp.ne.s32.totalorder %s437_s29, %s657_s8  ;;  %p665_p2 = scmp.lt.s32.totalorder %s663_s10, %s657_s8 }
  0x1c   : > { %581 = vmatpush3.msra.mxu0 %v266_v6 }
  0x1d   : > { %582 = vmatprep.subr.mxu0 %v735_v1  ;;  %p659_p13 = pnand %p658_p12, %p803_p4  ;;  %p666_p3 = por %p665_p2, %p664_p1 }
  0x1e   : > { %583 = vmatpush3.msra.mxu0 %v265_v8 }
  0x1f   : > { %584 = vmatprep.subr.mxu0 %v735_v1  ;;  %p660_p0 = pneg %p659_p13 }
  0x20   : > { %585 = vmatpush3.msra.mxu0 %v264_v9 }
  0x21   : > { %586 = vmatprep.subr.mxu0 %v735_v1  ;;  %p667_p5 = pnand %p666_p3, %p660_p0 }
  0x22   : > { %587 = vmatpush3.msra.mxu0 %v263_v10 }
  0x23   : > { %588 = vmatprep.subr.mxu0 %v735_v1 }
  0x24   : > { %589 = vmatpush3.msra.mxu0 %v262_v11 }
  0x25   : > { %591 = vmatmul.mubr.msk.f32.vlgmr.msra.gmra.mxu0 %vm270_vm2, %v261_v12 }
  0xdb   : > { %v414_v13 = vpop.f32.mrf.mxu1 }
  0xdd   : > { %v599_v14 = vpop.f32.mrf.mxu1 }
  0xe5   : > { %v340_v15 = vpop.f32.mrf.mxu0 }
  0xe6   : > { %v415_v16 = vadd.f32 %v414_v13, %v340_v15 }
  0xe7   : > { %v592_v17 = vpop.f32.mrf.mxu0 }
  0xe8   : > { %v418_v18 = vmax.f32 %v415_v16, 0.0 }
  0xea   : > { %420 = vst.msk [vmem:[%s241_s14] sm:$0xff] %vm419_vm3, %v418_v18 }
  0xeb   : > { %670 = shalt.err (!%p667_p5)
}
  0xec   : > { %s671_s11 = scalar_lea.hbm %s434_s6, 128  ;;  %s675_s21 = scalar_lea.hbm %s901_s4, 256 }
  0xed   : > { %p672_p6 = scmp.ne.s32.totalorder %s434_s6, %s671_s11  ;;  %p676_p10 = scmp.lt.s32.totalorder %s434_s6, %s901_s4 }
  0xee   : > { %p677_p11 = scmp.lt.s32.totalorder %s675_s21, %s671_s11 }
  0xef   : > { %p673_p7 = pnand %p672_p6, %p803_p4 }
  0xf0   : > { %p678_p12 = por %p677_p11, %p676_p10 }
  0xf1   : > { %p674_p9 = pneg %p673_p7 }
  0xf3   : > { %p679_p13 = pnand %p678_p12, %p674_p9 }
  0xf5   : > { %682 = shalt.err (!%p679_p13)
}
  0xf6   : > { %600 = dma.vmem_to_hbm [thread:$0]  (%p803_p4), %s437_s29, 128, %s434_s6, %s422_s7  }
  0xf7 PF: > { %p606_p0 = scmp.ge.s32.totalorder %s733_s20, 2  ;;  %s448_s26 = sand.u32 1, %s713_s15  }
  0xf8   : > { %s449_s14 = scalar_lea.sflag [#allocation3], %s448_s26 }
  0xf9   : > { %p603_p1 = pnand %p606_p0, %p810_p8 }
  0xfb   : > { %p604_p2 = pneg %p603_p1 }
  0xfd   : > { %708 = dma.done.wait (%p604_p2), %s449_s14, 128  }
  0xfe   : > { %710 = vsyncadd (%p604_p2), %s449_s14, 4294967168  ;;  %s17_s20 = sadd.s32 1, %s733_s20   ;;  %s904_s15 = smov %s717_s16 }
  0xff   : > { %p14_p3 = scmp.ge.s32.totalorder %s17_s20, 4   ;;  %s905_s16 = smov %s721_s17 }
 0x100   : > { %s906_s17 = smov %s816_s28  ;;  %s907_s18 = smov %s729_s19 }
 0x101   : > { %s908_s19 = smov %s910_s23  ;;  %16 = sbr.rel (!%p14_p3) target bundleno = 4 (0x4), region = 80 }
 0x106   :  { %454 = vsyncpa [#allocation3], 1 }
 0x107   :  { %456 = vsyncpa [#allocation3 + $0x1], 1 }

</bundles_post_ra>
